<compile_context>
chip_gen: v7x
topology: tpu7x:2x2x1
jax: 0.10.0
libtpu: 0.0.40
codegen_flags: <defaults>
</compile_context>

<pallas_src>
import numpy as np

import jax
import jax.numpy as jnp
from jax import lax
from jax.experimental import pallas as pl
from jax.experimental.pallas import tpu as pltpu

K = 7                 # spatial conv kernel size
PAD = (K - 1) // 2    # 3
KK = K * K            # 49

# bf16 banded conv-matrix pair costs 4 * HW^2 bytes; above this budget we fall
# back to the roll+mask conv so (table x2 buf) + (2 MiB in/out blocks x2 buf)
# stays inside v5e's 16 MiB default scoped VMEM.
_CONV_MATRIX_BYTES_MAX = 2 * 1024 * 1024


# ----------------------------------------------------------------------------
# Host-side parameter preparation (done once per set of weights).
# ----------------------------------------------------------------------------

def _fold_bn_into_conv(conv_w, bn_gamma, bn_beta, bn_mean, bn_var, eps):
    """Fold inference-mode BatchNorm2d(1) into the bias-free 2->1 conv."""
    bn_scale = bn_gamma / jnp.sqrt(bn_var + eps)
    fused_w = conv_w[0] * bn_scale                       # (2, K, K)
    fused_b = bn_beta - bn_mean * bn_scale               # scalar
    return fused_w, fused_b


def _conv_matrices(fused_w, height, width):
    """(2, HW, HW) bf16 banded matrices M with y = pmax @ M[0] + pmean @ M[1].

    M[plane][q, p] is the BN-folded tap weight that multiplies source pixel q
    when producing output pixel p; taps falling off the image border are
    simply absent (zero), i.e. the 'same'-padded 7x7 conv as a matrix.
    Built host-side with numpy (concrete weights only).
    """
    hw = height * width
    w = np.asarray(fused_w, dtype=np.float32)            # (2, K, K)
    rows = np.arange(height)[:, None]
    cols = np.arange(width)[None, :]
    p_idx = rows * width + cols                          # output pixel ids
    mats = np.zeros((2, hw, hw), dtype=np.float32)
    for dy in range(K):
        for dx in range(K):
            oy, ox = dy - PAD, dx - PAD
            valid = ((rows + oy >= 0) & (rows + oy < height) &
                     (cols + ox >= 0) & (cols + ox < width))
            p = p_idx[valid]
            q = ((rows + oy) * width + (cols + ox))[valid]
            mats[0, q, p] += w[0, dy, dx]
            mats[1, q, p] += w[1, dy, dx]
    return jnp.asarray(mats, dtype=jnp.bfloat16)


def _weight_mask_table(fused_w, height, width):
    """(2*49, HW) f32: folded tap weight * border-validity mask (roll path)."""
    hw = height * width
    rows = np.arange(height)[:, None]
    cols = np.arange(width)[None, :]
    masks = []
    for dy in range(K):
        for dx in range(K):
            oy, ox = dy - PAD, dx - PAD
            valid = ((rows + oy >= 0) & (rows + oy < height) &
                     (cols + ox >= 0) & (cols + ox < width))
            masks.append(valid.reshape(hw))
    mask = np.stack(masks, axis=0).astype(np.float32)                 # (49, HW)
    wflat = np.asarray(fused_w, dtype=np.float32).reshape(2, KK)      # (2, 49)
    return jnp.asarray((wflat[:, :, None] * mask[None]).reshape(2 * KK, hw))


# ----------------------------------------------------------------------------
# Kernel bodies.
# ----------------------------------------------------------------------------

def _make_conv_sigmoid(height, width, use_mxu):
    """Returns f(pmax, pmean, wtab_ref, bias_ref) -> sigmoid(conv(pooled))."""
    hw = height * width
    if use_mxu:
        def conv_sigmoid(pmax, pmean, wtab_ref, bias_ref):
            # MXU path: (Bb, HW) @ (HW, HW) per pooled plane.  The banded
            # matrices already carry BN-folded weights + zero-padding masks.
            # bf16 operands, f32 accumulate (precision only feeds a sigmoid).
            y = (jnp.dot(pmax.astype(jnp.bfloat16), wtab_ref[0],
                         preferred_element_type=jnp.float32)
                 + jnp.dot(pmean.astype(jnp.bfloat16), wtab_ref[1],
                           preferred_element_type=jnp.float32))
            y = y + bias_ref[0]
            return pl.reciprocal(1.0 + jnp.exp(-y), approx=True)
    else:
        # Fallback for large HW: tap (dy, dx) = one cyclic lane roll (XLU) of
        # each pooled plane + masked FMA; per-tap temporaries die immediately.
        shifts = [(-((dy - PAD) * width + (dx - PAD))) % hw
                  for dy in range(K) for dx in range(K)]

        def conv_sigmoid(pmax, pmean, wtab_ref, bias_ref):
            acc = jnp.zeros(pmax.shape, dtype=jnp.float32)
            for t in range(KK):                          # static 49-tap unroll
                s = shifts[t]
                rm = pltpu.roll(pmax, s, axis=1) if s else pmax
                rv = pltpu.roll(pmean, s, axis=1) if s else pmean
                acc = (acc
                       + wtab_ref[t:t + 1, :] * rm            # max-plane tap
                       + wtab_ref[KK + t:KK + t + 1, :] * rv)  # mean-plane tap
            y = acc + bias_ref[0]
            return pl.reciprocal(1.0 + jnp.exp(-y), approx=True)

    return conv_sigmoid


def _make_fused_kernel(height, width, channels, use_mxu):
    """Single-pass kernel: pool + conv + sigmoid + gate for one batch block."""
    conv_sigmoid = _make_conv_sigmoid(height, width, use_mxu)
    inv_c = 1.0 / channels

    def kernel(bias_ref, wtab_ref, x_ref, o_ref):
        # bias_ref : SMEM f32[1]              folded BN bias
        # wtab_ref : VMEM bf16[2,HW,HW] (MXU) | f32[98,HW] (roll fallback)
        # x_ref    : VMEM [Bb, C, HW]
        # o_ref    : VMEM [Bb, C, HW]
        # Channel pool; the full block value is NOT kept live across the conv
        # region — x_ref is re-read for the gating store (cuts peak pressure).
        xv = x_ref[...]
        pmax = jnp.max(xv, axis=1)                       # (Bb, HW)
        pmean = jnp.sum(xv, axis=1) * inv_c              # (Bb, HW)
        scale = conv_sigmoid(pmax, pmean, wtab_ref, bias_ref)   # (Bb, HW) f32
        o_ref[...] = (x_ref[...] * scale[:, None, :]).astype(o_ref.dtype)

    return kernel


def _make_scale_kernel(height, width, channels, use_mxu):
    """Two-pass path, pass 1: channel pool reduced over C blocks -> scale map."""
    conv_sigmoid = _make_conv_sigmoid(height, width, use_mxu)
    inv_c = 1.0 / channels

    def kernel(bias_ref, wtab_ref, x_ref, s_ref, max_acc, sum_acc):
        c = pl.program_id(1)

        @pl.when(c == 0)
        def _():
            max_acc[...] = jnp.full_like(max_acc, -jnp.inf)
            sum_acc[...] = jnp.zeros_like(sum_acc)

        xv = x_ref[...]                                   # (1, Cb, HW)
        max_acc[...] = jnp.maximum(max_acc[...], jnp.max(xv, axis=1))
        sum_acc[...] = sum_acc[...] + jnp.sum(xv, axis=1)

        @pl.when(c == pl.num_programs(1) - 1)
        def _():
            scale = conv_sigmoid(max_acc[...], sum_acc[...] * inv_c,
                                 wtab_ref, bias_ref)      # (1, HW) f32
            s_ref[...] = scale[:, None, :]                # (1, 1, HW)

    return kernel


def _gating_kernel(s_ref, x_ref, o_ref):
    """Two-pass path, pass 2: out = x * scale (scale broadcast over C)."""
    o_ref[...] = (x_ref[...] * s_ref[...]).astype(o_ref.dtype)


# ----------------------------------------------------------------------------
# Block sizing.
# ----------------------------------------------------------------------------

def _vmem_block_budget_bytes():
    """Per-input-block budget.

    ~2 MiB input blocks => in + out, each double-buffered, = 8 MiB, which fits
    every generation's *default* scoped VMEM (16 MiB v5e, 32 MiB v6e/v7x)
    with room for the conv table, while staying past the measured
    ~85%-of-roofline tile-size knee.  Clamped with get_tpu_info for v7x-class
    64 MiB parts.  (v6e/v5e could take bigger blocks with vmem_limit_bytes
    raised, but the extra gain flattens past this size.)
    """
    try:
        cap = pltpu.get_tpu_info().vmem_capacity_bytes
    except Exception:  # pragma: no cover - off-TPU / API unavailable
        cap = 64 * 1024 * 1024
    return min(2 * 1024 * 1024, cap // 32)


def _pick_batch_block(batch, bytes_per_batch, budget, *, min_grid=4):
    """Largest divisor of `batch` fitting `budget`, keeping >= min(batch,
    min_grid) grid steps so the pipeline / dual-TC sharding has extent."""
    bb = max(1, min(batch, budget // max(bytes_per_batch, 1)))
    bb = min(bb, max(1, batch // min(min_grid, batch)))
    while batch % bb:
        bb -= 1
    return bb


def _pick_channel_block(channels, bytes_per_channel, budget):
    """Largest channel block that divides C, satisfies the (8, 128)
    second-minor block constraint (multiple of 8 or the full extent) and fits
    the budget; falls back to the smallest valid block."""
    valid = [d for d in range(1, channels + 1)
             if channels % d == 0 and (d == channels or d % 8 == 0)]
    fitting = [d for d in valid if d * bytes_per_channel <= budget]
    return max(fitting) if fitting else min(valid)


# ----------------------------------------------------------------------------
# Wrapper.
# ----------------------------------------------------------------------------

def spatial_gate(x, conv_w, bn_gamma, bn_beta, bn_mean, bn_var, *,
                 eps=1e-5, two_pass=None, use_mxu_conv=None):
    """SpatialGate forward.

    x: [B, C, H, W] (NCHW).  conv_w: [1, 2, 7, 7].  BN params are scalars
    (inference-mode running statistics; BN is folded into the conv).
    `two_pass` / `use_mxu_conv` override the automatic path selection.
    """
    B, C, H, W = x.shape
    hw = H * W                                           # flat lane axis

    fused_w, fused_b = _fold_bn_into_conv(conv_w, bn_gamma, bn_beta,
                                          bn_mean, bn_var, eps)
    if use_mxu_conv is None:
        use_mxu_conv = 4 * hw * hw <= _CONV_MATRIX_BYTES_MAX  # bf16 pair bytes
    if use_mxu_conv:
        wtab = _conv_matrices(fused_w, H, W)             # (2, HW, HW) bf16
    else:
        wtab = _weight_mask_table(fused_w, H, W)         # (98, HW) f32
    wtab_rank = wtab.ndim
    bias = jnp.reshape(fused_b, (1,)).astype(jnp.float32)

    x_flat = x.reshape(B, C, hw)                         # contiguous merge
    budget = _vmem_block_budget_bytes()
    itemsize = x.dtype.itemsize
    per_batch_bytes = C * hw * itemsize
    if two_pass is None:
        two_pass = per_batch_bytes > budget              # can't block by batch alone

    smem_spec = pl.BlockSpec(memory_space=pltpu.MemorySpace.SMEM)

    if not two_pass:
        # ---- Fused single-pass path (one batch block fits VMEM budget) ----
        block_b = _pick_batch_block(B, per_batch_bytes, budget)
        grid = (B // block_b,)
        out_flat = pl.pallas_call(
            _make_fused_kernel(H, W, C, use_mxu_conv),
            out_shape=jax.ShapeDtypeStruct((B, C, hw), x.dtype),
            grid=grid,
            in_specs=[
                smem_spec,                                              # bias
                pl.BlockSpec(wtab.shape, lambda b: (0,) * wtab_rank),   # conv table (VMEM-resident)
                pl.BlockSpec((block_b, C, hw), lambda b: (b, 0, 0)),    # x block
            ],
            out_specs=pl.BlockSpec((block_b, C, hw), lambda b: (b, 0, 0)),
            compiler_params=pltpu.CompilerParams(
                dimension_semantics=("parallel",)),
        )(bias, wtab, x_flat)
        return out_flat.reshape(B, C, H, W)

    # ---- Two-pass channel-blocked path (large C*HW per batch element) ----
    # Pass 1: scale map (B, 1, HW) — channel pool reduced over C blocks
    # ("arbitrary" last axis), conv + sigmoid on the final block.
    bc1 = _pick_channel_block(C, hw * itemsize, budget)
    scale_map = pl.pallas_call(
        _make_scale_kernel(H, W, C, use_mxu_conv),
        out_shape=jax.ShapeDtypeStruct((B, 1, hw), jnp.float32),
        grid=(B, C // bc1),
        in_specs=[
            smem_spec,
            pl.BlockSpec(wtab.shape, lambda b, c: (0,) * wtab_rank),
            pl.BlockSpec((1, bc1, hw), lambda b, c: (b, c, 0)),
        ],
        out_specs=pl.BlockSpec((1, 1, hw), lambda b, c: (b, 0, 0)),
        scratch_shapes=[pltpu.VMEM((1, hw), jnp.float32),   # running max
                        pltpu.VMEM((1, hw), jnp.float32)],  # running sum
        compiler_params=pltpu.CompilerParams(
            dimension_semantics=("parallel", "arbitrary")),
    )(bias, wtab, x_flat)

    # Pass 2: gating, gridded over (batch blocks, channel blocks), both
    # parallel — exposes B*C/block_c extent for megacore / v7x dual-TC.
    bc2 = _pick_channel_block(C, hw * itemsize, budget)
    bb2 = _pick_batch_block(B, bc2 * hw * itemsize, budget, min_grid=2)
    out_flat = pl.pallas_call(
        _gating_kernel,
        out_shape=jax.ShapeDtypeStruct((B, C, hw), x.dtype),
        grid=(B // bb2, C // bc2),
        in_specs=[
            pl.BlockSpec((bb2, 1, hw), lambda b, c: (b, 0, 0)),     # scale map
            pl.BlockSpec((bb2, bc2, hw), lambda b, c: (b, c, 0)),   # x block
        ],
        out_specs=pl.BlockSpec((bb2, bc2, hw), lambda b, c: (b, c, 0)),
        compiler_params=pltpu.CompilerParams(
            dimension_semantics=("parallel", "parallel")),
    )(scale_map, x_flat)
    return out_flat.reshape(B, C, H, W)


# ----------------------------------------------------------------------------
# Pure-JAX reference (mirrors the PyTorch module, inference-mode BN).
# ----------------------------------------------------------------------------

def reference(x, conv_w, bn_gamma, bn_beta, bn_mean, bn_var, eps=1e-5):
    x_max = jnp.max(x, axis=1, keepdims=True)
    x_mean = jnp.mean(x, axis=1, keepdims=True)
    pooled = jnp.concatenate([x_max, x_mean], axis=1)            # (B, 2, H, W)
    y = lax.conv_general_dilated(
        pooled, conv_w, window_strides=(1, 1),
        padding=((PAD, PAD), (PAD, PAD)),
        dimension_numbers=("NCHW", "OIHW", "NCHW"))              # (B, 1, H, W)
    y = bn_gamma * (y - bn_mean) / jnp.sqrt(bn_var + eps) + bn_beta
    return x * jax.nn.sigmoid(y)


if __name__ == "__main__":
    key = jax.random.PRNGKey(0)
    k_x, k_w, k_g, k_b, k_m, k_v = jax.random.split(key, 6)

    B, C, H, W = 2, 4, 16, 16
    x = jax.random.normal(k_x, (B, C, H, W), dtype=jnp.float32)

    # Deterministic synthetic parameters (Conv2d(2,1,7) weight + BatchNorm2d(1)).
    conv_w = jax.random.normal(k_w, (1, 2, K, K), dtype=jnp.float32) * 0.1
    bn_gamma = 1.0 + 0.1 * jax.random.normal(k_g, (), dtype=jnp.float32)
    bn_beta = 0.1 * jax.random.normal(k_b, (), dtype=jnp.float32)
    bn_mean = 0.1 * jax.random.normal(k_m, (), dtype=jnp.float32)
    bn_var = 0.5 + jnp.abs(jax.random.normal(k_v, (), dtype=jnp.float32))

    ref = reference(x, conv_w, bn_gamma, bn_beta, bn_mean, bn_var)

    def check(out, name):
        out = jax.block_until_ready(out)
        assert out.shape == ref.shape, name
        # Tolerance covers the bf16 MXU conv (bf16 weights & pooled planes,
        # f32 accumulate) plus the EUP approximate reciprocal in the sigmoid;
        # any indexing / conv-matrix bug would show up as O(0.1-1) errors.
        assert jnp.allclose(out, ref, rtol=5e-3, atol=5e-3), f"mismatch: {name}"

    # 1) Default path: fused single-pass kernel, MXU banded-matrix conv.
    check(spatial_gate(x, conv_w, bn_gamma, bn_beta, bn_mean, bn_var),
          "fused+mxu")
    # 2) Roll+mask conv fallback (auto-selected for large H*W) — forced here
    #    for coverage.
    check(spatial_gate(x, conv_w, bn_gamma, bn_beta, bn_mean, bn_var,
                       use_mxu_conv=False), "fused+roll")
    # 3) Two-pass channel-blocked path (auto-selected when one batch element
    #    exceeds the per-block VMEM budget) — forced here for coverage.
    check(spatial_gate(x, conv_w, bn_gamma, bn_beta, bn_mean, bn_var,
                       two_pass=True), "two_pass+mxu")

    # TODO(synk): training-mode BatchNorm (batch statistics + running-stat
    # update) is not implemented; BN is folded with running stats (eval mode).
    print("KERNEL_OK")
</pallas_src>

<mosaic_0001>
module attributes {stable_mosaic.version = 11 : i64} {
  func.func @kernel(%arg0: i32, %arg1: memref<1xf32, #tpu.memory_space<smem>>, %arg2: memref<2x256x256xbf16, #tpu.memory_space<vmem>>, %arg3: memref<1x4x256xf32, #tpu.memory_space<vmem>>, %arg4: memref<1x4x256xf32, #tpu.memory_space<vmem>>) attributes {dimension_semantics = [#tpu.dimension_semantics<parallel>], iteration_bounds = array<i64: 2>, scalar_prefetch = 0 : i64, scratch_operands = 0 : i64, tpu.core_type = #tpu.core_type<tc>, window_params = [{transform_indices = @transform_0, window_bounds = array<i64: 1>}, {pipeline_mode = #tpu.pipeline_mode<synchronous>, transform_indices = @transform_1, window_bounds = array<i64: 2, 256, 256>}, {transform_indices = @transform_2, window_bounds = array<i64: 1, 4, 256>}, {transform_indices = @transform_3, window_bounds = array<i64: 1, 4, 256>}]} {
    %c0 = arith.constant 0 : index
    %c0_0 = arith.constant 0 : index
    %c0_1 = arith.constant 0 : index
    %0 = vector.load %arg3[%c0, %c0_0, %c0_1] : memref<1x4x256xf32, #tpu.memory_space<vmem>>, vector<1x4x256xf32>
    %cst = arith.constant dense<0xFF800000> : vector<1x256xf32>
    %1 = vector.multi_reduction <maximumf>, %0, %cst [1] : vector<1x4x256xf32> to vector<1x256xf32>
    %cst_2 = arith.constant dense<0.000000e+00> : vector<1x256xf32>
    %2 = vector.multi_reduction <add>, %0, %cst_2 [1] : vector<1x4x256xf32> to vector<1x256xf32>
    %cst_3 = arith.constant 2.500000e-01 : f32
    %3 = vector.broadcast %cst_3 : f32 to vector<1x256xf32>
    %4 = arith.mulf %2, %3 : vector<1x256xf32>
    %5 = arith.truncf %1 : vector<1x256xf32> to vector<1x256xbf16>
    %c0_4 = arith.constant 0 : index
    %c0_5 = arith.constant 0 : index
    %c0_6 = arith.constant 0 : index
    %6 = vector.load %arg2[%c0_4, %c0_5, %c0_6] : memref<2x256x256xbf16, #tpu.memory_space<vmem>>, vector<1x256x256xbf16>
    %7 = vector.shape_cast %6 : vector<1x256x256xbf16> to vector<256x256xbf16>
    %cst_7 = arith.constant dense<0.000000e+00> : vector<1x256xf32>
    %8 = tpu.matmul %5, %7, %cst_7 {dimension_numbers = #tpu.dot_dimension_numbers<[1], [0], [0], [1], [0, 0, 1, 1], [], []>} : vector<1x256xbf16>, vector<256x256xbf16>, vector<1x256xf32> -> vector<1x256xf32>
    %9 = arith.truncf %4 : vector<1x256xf32> to vector<1x256xbf16>
    %c1 = arith.constant 1 : index
    %c0_8 = arith.constant 0 : index
    %c0_9 = arith.constant 0 : index
    %10 = vector.load %arg2[%c1, %c0_8, %c0_9] : memref<2x256x256xbf16, #tpu.memory_space<vmem>>, vector<1x256x256xbf16>
    %11 = vector.shape_cast %10 : vector<1x256x256xbf16> to vector<256x256xbf16>
    %cst_10 = arith.constant dense<0.000000e+00> : vector<1x256xf32>
    %12 = tpu.matmul %9, %11, %cst_10 {dimension_numbers = #tpu.dot_dimension_numbers<[1], [0], [0], [1], [0, 0, 1, 1], [], []>} : vector<1x256xbf16>, vector<256x256xbf16>, vector<1x256xf32> -> vector<1x256xf32>
    %13 = arith.addf %8, %12 : vector<1x256xf32>
    %c0_11 = arith.constant 0 : index
    %14 = memref.load %arg1[%c0_11] : memref<1xf32, #tpu.memory_space<smem>>
    %15 = vector.broadcast %14 : f32 to vector<1x256xf32>
    %16 = arith.addf %13, %15 : vector<1x256xf32>
    %cst_12 = arith.constant 0.000000e+00 : f32
    %17 = vector.broadcast %cst_12 : f32 to vector<1x256xf32>
    %18 = arith.subf %17, %16 : vector<1x256xf32>
    %19 = math.exp %18 : vector<1x256xf32>
    %cst_13 = arith.constant 1.000000e+00 : f32
    %20 = vector.broadcast %cst_13 : f32 to vector<1x256xf32>
    %21 = arith.addf %20, %19 : vector<1x256xf32>
    %22 = tpu.reciprocal %21 {approx = true} : vector<1x256xf32> -> vector<1x256xf32>
    %c0_14 = arith.constant 0 : index
    %c0_15 = arith.constant 0 : index
    %c0_16 = arith.constant 0 : index
    %23 = vector.load %arg3[%c0_14, %c0_15, %c0_16] : memref<1x4x256xf32, #tpu.memory_space<vmem>>, vector<1x4x256xf32>
    %24 = vector.shape_cast %22 : vector<1x256xf32> to vector<1x1x256xf32>
    %25 = vector.broadcast %24 : vector<1x1x256xf32> to vector<1x4x256xf32>
    %26 = arith.mulf %23, %25 : vector<1x4x256xf32>
    %c0_17 = arith.constant 0 : index
    %c0_18 = arith.constant 0 : index
    %c0_19 = arith.constant 0 : index
    %27 = vector.load %arg4[%c0_17, %c0_18, %c0_19] : memref<1x4x256xf32, #tpu.memory_space<vmem>>, vector<1x4x256xf32>
    tpu.vector_store %arg4[%c0_17, %c0_18, %c0_19], %26 {strides = array<i32>} : memref<1x4x256xf32, #tpu.memory_space<vmem>>, vector<1x4x256xf32>,
    return
  }
  func.func @transform_0(%arg0: i32) -> i32 {
    %c0_i32 = arith.constant 0 : i32
    %c0_i32_0 = arith.constant 0 : i32
    return %c0_i32 : i32
  }
  func.func @transform_1(%arg0: i32) -> (i32, i32, i32) {
    %c0_i32 = arith.constant 0 : i32
    %c0_i32_0 = arith.constant 0 : i32
    %c0_i32_1 = arith.constant 0 : i32
    %c0_i32_2 = arith.constant 0 : i32
    return %c0_i32, %c0_i32_0, %c0_i32_1 : i32, i32, i32
  }
  func.func @transform_2(%arg0: i32) -> (i32, i32, i32) {
    %c0_i32 = arith.constant 0 : i32
    %c0_i32_0 = arith.constant 0 : i32
    %c0_i32_1 = arith.constant 0 : i32
    return %arg0, %c0_i32, %c0_i32_0 : i32, i32, i32
  }
  func.func @transform_3(%arg0: i32) -> (i32, i32, i32) {
    %c0_i32 = arith.constant 0 : i32
    %c0_i32_0 = arith.constant 0 : i32
    %c0_i32_1 = arith.constant 0 : i32
    return %arg0, %c0_i32, %c0_i32_0 : i32, i32, i32
  }
}

</mosaic_0001>

<bundles_post_ra>
// kernel: tpu_custom_call.1
= control target key start
LH: loop header
LB: loop body
LE: loop exit
PB: predicated region body
PF: predicated region fallthrough
CT: control target
= control target key end

     0   :  { %s1452_s0 = inlined_call_operand.<no memory space> [shape: f32[1], index: 0, kind: input, shape index: {}]   ;;  %s1453_s1 = inlined_call_operand.hbm [shape: bf16[2,256,256], index: 1, kind: input, shape index: {}]   ;;  %s1454_s2 = inlined_call_operand.hbm [shape: f32[2,4,256], index: 2, kind: input, shape index: {}]   ;;  %s1455_s3 = inlined_call_operand.hbm [shape: f32[2,4,256], index: 3, kind: output, shape index: {}]  }
   0x1   :  { %8 = sst [smem:[#allocation2]] %s1452_s0 }
   0x2   :  { %9 = vsyncpa [#allocation4], 0 }
   0x3   :  { %10 = vsyncpa [#allocation7], 0 }
   0x4   :  { %12 = vsyncpa [#allocation7 + $0x1], 0 }
   0x5   :  { %13 = vsyncpa [#allocation5], 0 }
   0x6   :  { %15 = vsyncpa [#allocation5 + $0x1], 0  ;;  %s1238_s14 = smov 0   ;;  %s1240_s15 = smov 0  }
   0x7   :  { %s1242_s16 = smov 0   ;;  %s1244_s17 = smov 0  }
   0x8 LB: > { %s1259_s0 = sadd.s32 4294967295, %s1208_s17   ;;  %s834_s18 = sadd.s32 4294967294, %s1208_s17   ;;  %s1208_s17 = sphi %s1244_s17, %s1475_s17   ;;  %s1204_s16 = sphi %s1242_s16, %s1474_s16   ;;  %s1200_s15 = sphi %s1240_s15, %s1473_s15   ;;  %s1196_s14 = sphi %s1238_s14, %s1472_s14  }
   0x9   : > { %p83_p0 = scmp.ne.s32.totalorder %s1200_s15, %s1196_s14  ;;  %p1456_p1 = scmp.eq.s32.totalorder %s1259_s0, 0 }
   0xa   : > { %p113_p3 = scmp.eq.s32.totalorder %s834_s18, 1  ;;  %p835_p5 = scmp.ge.s32.totalorder %s1208_s17, 1 }
   0xb   : > { %p1268_p4 = por %p1456_p1, %p83_p0  ;;  %p120_p7 = scmp.lt.s32.totalorder %s1208_s17, 3 }
   0xc   : > { %p1273_p6 = por %p113_p3, %p83_p0  ;;  %s1210_s22 = smov [#allocation3]  }
   0xd   : > { %s1459_s19 = scalar_select %p1268_p4, 1, 0 }
   0xe   : > { %s1460_s20 = scalar_select %p1273_p6, 1, 0 }
   0xf   : > { %p1278_p8 = pnand %p835_p5, %p120_p7  ;;  %s135_s23 = sshll.u32 %s1210_s22, 4  ;;  %s1282_s23 = int_to_ptr.vmem [resolvable:$true] %s135_s23 }
  0x10   : > { %s1294_s25 = sadd.s32 1, %s1208_s17   ;;  %s70_s26 = sadd.s32 1, %s1204_s16 }
  0x11   : > { %s1461_s21 = scalar_select %p1278_p8, 1, 0 }
  0x12   : > { %p924_p9 = pneg %p1278_p8  ;;  %s67_s27 = ssub.s32 %s1208_s17, %s1294_s25 }
  0x13   : > { %s1080_s30 = scalar_lea.hbm %s1453_s1, 8192 }
  0x14   : > { %p1289_p11 = pnand %p924_p9, %p1456_p1  ;;  %p1081_p12 = scmp.ne.s32.totalorder %s1453_s1, %s1080_s30 }
  0x15   : > { %p1087_p5 = scmp.lt.u32.totalorder %s1080_s30, %s1453_s1 }
  0x16   : > { %p1082_p13 = pneg %p1289_p11 }
  0x18   : > { %p1083_p0 = pnand %p1082_p13, %p1081_p12 }
  0x1a   : > { %p1084_p3 = pneg %p1083_p0 }
  0x1c   : > { %p1089_p7 = pnand %p1087_p5, %p1084_p3 }
  0x1e   : > { %1092 = shalt.err (!%p1089_p7)
}
  0x1f   : > { %s1093_s8 = scalar_lea.vmem %s1282_s23, 8192  ;;  %p1101_p2 = scmp.lt.s32.totalorder %s1282_s23, %s1282_s23 }
  0x20   : > { %p1094_p9 = scmp.ne.s32.totalorder %s1282_s23, %s1093_s8  ;;  %p1102_p6 = scmp.lt.s32.totalorder %s1093_s8, %s1093_s8 }
  0x22   : > { %p1096_p10 = pnand %p1094_p9, %p1082_p13  ;;  %p1103_p4 = por %p1102_p6, %p1101_p2 }
  0x24   : > { %p1097_p1 = pneg %p1096_p10 }
  0x26   : > { %p1104_p8 = pnand %p1103_p4, %p1097_p1 }
  0x28   : > { %1107 = shalt.err (!%p1104_p8)
}
  0x29   : > { %s1211_s9 = smov 128   ;;  %s1212_s10 = smov 8  }
  0x2a   : > { %927 = dma.hbm_to_vmem [thread:$0]  (!%p1289_p11), %s1453_s1, 8192, %s1282_s23, [#allocation4], %s1211_s9, %s1211_s9, %s1212_s10  }
  0x2b   : > { %p68_p2 = scmp.eq.s32.totalorder %s67_s27, 0  ;;  %p77_p1 = scmp.ne.s32.totalorder %s1204_s16, %s1200_s15 }
  0x2c   : > { %p78_p4 = scmp.eq.s32.totalorder %s1208_s17, 0  ;;  %p937_p6 = scmp.lt.s32.totalorder %s1208_s17, 2 }
  0x2d   : > { %s1325_s13 = scalar_select %p68_p2, %s1204_s16, %s70_s26  }
  0x2e   : > { %p79_p8 = por %p78_p4, %p77_p1  ;;  %p1463_p10 = scmp.eq.s32.totalorder %s1259_s0, 1 }
  0x2f   : > { %s149_s22 = sand.u32 1, %s1204_s16   ;;  %s914_s28 = sshll.u32 %s1208_s17, 7 }
  0x30   : > { %p1329_p12 = por %p1463_p10, %p77_p1  ;;  %s838_s29 = sshll.u32 %s149_s22, 3 }
  0x31   : > { %s1338_s4 = scalar_lea.hbm %s1454_s2, %s914_s28  ;;  %s153_s23 = scalar_lea.vmem [#allocation6], %s838_s29 }
  0x32   : > { %s161_s26 = sshll.u32 %s153_s23, 4  ;;  %p1340_p11 = pnand %p937_p6, %p79_p8  ;;  %s1344_s26 = int_to_ptr.vmem [resolvable:$true] %s161_s26 }
  0x33   : > { %s150_s5 = scalar_lea.sflag [#allocation7], %s149_s22  ;;  %s1108_s6 = scalar_lea.hbm %s1338_s4, 128 }
  0x34   : > { %p1109_p13 = scmp.ne.s32.totalorder %s1338_s4, %s1108_s6  ;;  %p1110_p0 = pneg %p1340_p11 }
  0x35   : > { %s1113_s9 = scalar_lea.hbm %s1454_s2, 256  ;;  %p1114_p7 = scmp.lt.u32.totalorder %s1338_s4, %s1454_s2 }
  0x36   : > { %p1111_p3 = pnand %p1110_p0, %p1109_p13  ;;  %p1115_p9 = scmp.lt.u32.totalorder %s1113_s9, %s1108_s6 }
  0x37   : > { %p1117_p1 = scmp.lt.u32.totalorder %s1108_s6, %s1338_s4 }
  0x38   : > { %p1112_p5 = pneg %p1111_p3  ;;  %p1116_p2 = por %p1115_p9, %p1114_p7 }
  0x3a   : > { %p1118_p4 = por %p1117_p1, %p1116_p2 }
  0x3c   : > { %p1119_p6 = pnand %p1118_p4, %p1112_p5 }
  0x3e   : > { %1122 = shalt.err (!%p1119_p6)
}
  0x3f   : > { %s1123_s12 = scalar_lea.vmem %s1344_s26, 128  ;;  %s1213_s22 = smov [#allocation6]  }
  0x40   : > { %p1124_p8 = scmp.ne.s32.totalorder %s1344_s26, %s1123_s12  ;;  %s1128_s28 = sshll.u32 %s1213_s22, 4  ;;  %s1129_s28 = int_to_ptr.vmem [resolvable:$false] %s1128_s28 }
  0x41   : > { %s1130_s29 = scalar_lea.vmem %s1129_s28, 256  ;;  %p1131_p3 = scmp.lt.s32.totalorder %s1344_s26, %s1129_s28 }
  0x42   : > { %p1126_p10 = pnand %p1124_p8, %p1110_p0  ;;  %p1132_p7 = scmp.lt.s32.totalorder %s1130_s29, %s1123_s12 }
  0x44   : > { %p1127_p13 = pneg %p1126_p10  ;;  %p1133_p9 = por %p1132_p7, %p1131_p3 }
  0x46   : > { %p1134_p2 = pnand %p1133_p9, %p1127_p13 }
  0x48   : > { %1137 = shalt.err (!%p1134_p2)
}
  0x49   : > { %931 = dma.hbm_to_vmem [thread:$0]  (!%p1340_p11), %s1338_s4, 128, %s1344_s26, %s150_s5  }
  0x4a   : > { %p1466_p5 = scmp.ne.s32.totalorder %s1461_s21, 0 }
  0x4b   : > { %p1467_p0 = scmp.eq.s32.totalorder (!%p1466_p5), %s1259_s0, 0 }
  0x4c   : > { %170 = sbr.rel (%p1466_p5) target bundleno = 419 (0x1a3), region = 32 }
  0x53   : > { %1183 = dma.done.wait (%p1467_p0), [#allocation4], 8192   ;;  %p1468_p1 = pmov %p1467_p0 }
  0x54   : > { %s1378_s24 = sand.u32 1, %s1200_s15   ;;  %p1469_p11 = scmp.ne.s32.totalorder %s1459_s19, 0 }
  0x55   : > { %1185 = vsyncadd (%p1468_p1), [#allocation4], 4294959104  ;;  %s843_s30 = sshll.u32 %s1378_s24, 3  ;;  %s177_s23 = scalar_lea.sflag [#allocation7], %s1378_s24 }
  0x56   : > { %s1384_s4 = scalar_lea.vmem [#allocation6], %s843_s30 }
  0x57   : > { %1187 = dma.done.wait (%p1469_p11), %s177_s23, 128  }
  0x58   : > { %1189 = vsyncadd (%p1469_p11), %s177_s23, 4294967168  ;;  %v975_v0 = vld [vmem:[#allocation3 + $0x104] ss:$8 sps:$4 sm:$0xff]   ;;  %v979_v2 = vld [vmem:[#allocation3 + $0x100] ss:$8 sps:$4 sm:$0xff]   ;;  %vm207_vm0 = vcmask 1043456  }
  0x59   : > { %v977_v1 = vld [vmem:[#allocation3 + $0x4] ss:$8 sps:$4 sm:$0xff]   ;;  %467 = vmatprep.subr.bf16.mxu0 %v975_v0  ;;  %v980_v3 = vld [vmem:[#allocation3] ss:$8 sps:$4 sm:$0xff]   ;;  %v981_v4 = vld [vmem:[#allocation3 + $0x114] ss:$8 sps:$4 sm:$0xff]  }
  0x5a   : > { %668 = vmatprep.subr.bf16.mxu1 %v977_v1  ;;  %468 = vmatpush1.bf16.msra.mxu0 %v979_v2  ;;  %v983_v5 = vld [vmem:[#allocation3 + $0x14] ss:$8 sps:$4 sm:$0xff]   ;;  %v985_v6 = vld [vmem:[#allocation3 + $0x110] ss:$8 sps:$4 sm:$0xff]   ;;  %v987_v8 = vld [vmem:[#allocation3 + $0x124] ss:$8 sps:$4 sm:$0xff]  }
  0x5b   : > { %669 = vmatpush1.bf16.msra.mxu1 %v980_v3  ;;  %469 = vmatprep.subr.bf16.mxu0 %v981_v4  ;;  %v986_v7 = vld [vmem:[#allocation3 + $0x10] ss:$8 sps:$4 sm:$0xff]   ;;  %v989_v9 = vld [vmem:[#allocation3 + $0x24] ss:$8 sps:$4 sm:$0xff]   ;;  %v991_v10 = vld [vmem:[#allocation3 + $0x120] ss:$8 sps:$4 sm:$0xff]  }
  0x5c   : > { %670 = vmatprep.subr.bf16.mxu1 %v983_v5  ;;  %v992_v11 = vld [vmem:[#allocation3 + $0x20] ss:$8 sps:$4 sm:$0xff]   ;;  %v993_v12 = vld [vmem:[#allocation3 + $0x134] ss:$8 sps:$4 sm:$0xff]   ;;  %v997_v14 = vld [vmem:[#allocation3 + $0x130] ss:$8 sps:$4 sm:$0xff]  }
  0x5d   : > { %v995_v13 = vld [vmem:[#allocation3 + $0x34] ss:$8 sps:$4 sm:$0xff]   ;;  %v998_v15 = vld [vmem:[#allocation3 + $0x30] ss:$8 sps:$4 sm:$0xff]   ;;  %v999_v16 = vld [vmem:[#allocation3 + $0x144] ss:$8 sps:$4 sm:$0xff]  }
  0x5e   : > { %470 = vmatpush1.bf16.msra.mxu0 %v985_v6  ;;  %v1001_v17 = vld [vmem:[#allocation3 + $0x44] ss:$8 sps:$4 sm:$0xff]   ;;  %v1003_v18 = vld [vmem:[#allocation3 + $0x140] ss:$8 sps:$4 sm:$0xff]   ;;  %v1005_v20 = vld [vmem:[#allocation3 + $0x154] ss:$8 sps:$4 sm:$0xff]  }
  0x5f   : > { %671 = vmatpush1.bf16.msra.mxu1 %v986_v7  ;;  %471 = vmatprep.subr.bf16.mxu0 %v987_v8  ;;  %v1004_v19 = vld [vmem:[#allocation3 + $0x40] ss:$8 sps:$4 sm:$0xff]   ;;  %v1007_v21 = vld [vmem:[#allocation3 + $0x54] ss:$8 sps:$4 sm:$0xff]   ;;  %v1009_v22 = vld [vmem:[#allocation3 + $0x150] ss:$8 sps:$4 sm:$0xff]  }
  0x60   : > { %672 = vmatprep.subr.bf16.mxu1 %v989_v9  ;;  %v1010_v23 = vld [vmem:[#allocation3 + $0x50] ss:$8 sps:$4 sm:$0xff]   ;;  %v1011_v24 = vld [vmem:[#allocation3 + $0x164] ss:$8 sps:$4 sm:$0xff]   ;;  %v1015_v26 = vld [vmem:[#allocation3 + $0x160] ss:$8 sps:$4 sm:$0xff]  }
  0x61   : > { %v1013_v25 = vld [vmem:[#allocation3 + $0x64] ss:$8 sps:$4 sm:$0xff]   ;;  %v1016_v27 = vld [vmem:[#allocation3 + $0x60] ss:$8 sps:$4 sm:$0xff]   ;;  %v1017_v28 = vld [vmem:[#allocation3 + $0x174] ss:$8 sps:$4 sm:$0xff]  }
  0x62   : > { %472 = vmatpush1.bf16.msra.mxu0 %v991_v10  ;;  %v1019_v29 = vld [vmem:[#allocation3 + $0x74] ss:$8 sps:$4 sm:$0xff]   ;;  %v1021_v30 = vld [vmem:[#allocation3 + $0x170] ss:$8 sps:$4 sm:$0xff]   ;;  %v1023_v32 = vld [vmem:[#allocation3 + $0x184] ss:$8 sps:$4 sm:$0xff]  }
  0x63   : > { %673 = vmatpush1.bf16.msra.mxu1 %v992_v11  ;;  %473 = vmatprep.subr.bf16.mxu0 %v993_v12  ;;  %v1022_v31 = vld [vmem:[#allocation3 + $0x70] ss:$8 sps:$4 sm:$0xff]   ;;  %v1025_v33 = vld [vmem:[#allocation3 + $0x84] ss:$8 sps:$4 sm:$0xff]   ;;  %v1027_v34 = vld [vmem:[#allocation3 + $0x180] ss:$8 sps:$4 sm:$0xff]  }
  0x64   : > { %674 = vmatprep.subr.bf16.mxu1 %v995_v13  ;;  %v1028_v35 = vld [vmem:[#allocation3 + $0x80] ss:$8 sps:$4 sm:$0xff]   ;;  %v1029_v36 = vld [vmem:[#allocation3 + $0x194] ss:$8 sps:$4 sm:$0xff]   ;;  %v1033_v38 = vld [vmem:[#allocation3 + $0x190] ss:$8 sps:$4 sm:$0xff]  }
  0x65   : > { %v1031_v37 = vld [vmem:[#allocation3 + $0x94] ss:$8 sps:$4 sm:$0xff]   ;;  %v1034_v39 = vld [vmem:[#allocation3 + $0x90] ss:$8 sps:$4 sm:$0xff]   ;;  %v1035_v40 = vld [vmem:[#allocation3 + $0x1a4] ss:$8 sps:$4 sm:$0xff]  }
  0x66   : > { %474 = vmatpush1.bf16.msra.mxu0 %v997_v14  ;;  %v1037_v41 = vld [vmem:[#allocation3 + $0xa4] ss:$8 sps:$4 sm:$0xff]   ;;  %v1039_v42 = vld [vmem:[#allocation3 + $0x1a0] ss:$8 sps:$4 sm:$0xff]   ;;  %v1041_v44 = vld [vmem:[#allocation3 + $0x1b4] ss:$8 sps:$4 sm:$0xff]  }
  0x67   : > { %675 = vmatpush1.bf16.msra.mxu1 %v998_v15  ;;  %475 = vmatprep.subr.bf16.mxu0 %v999_v16  ;;  %v1040_v43 = vld [vmem:[#allocation3 + $0xa0] ss:$8 sps:$4 sm:$0xff]   ;;  %v1043_v45 = vld [vmem:[#allocation3 + $0xb4] ss:$8 sps:$4 sm:$0xff]   ;;  %v1045_v50 = vld [vmem:[#allocation3 + $0x1b0] ss:$8 sps:$4 sm:$0xff]  }
  0x68   : > { %676 = vmatprep.subr.bf16.mxu1 %v1001_v17  ;;  %v1391_v46 = vld [vmem:[%s1384_s4] sm:$0xff]  ;;  %v1046_v51 = vld [vmem:[#allocation3 + $0xb0] ss:$8 sps:$4 sm:$0xff]   ;;  %v1053_v4 = vld [vmem:[#allocation3 + $0x1d4] ss:$8 sps:$4 sm:$0xff]   ;;  %s709_s19 = sld [smem:[#allocation2]] }
  0x69   : > { %v205_v47 = vcombine.high %v1391_v46, %v1391_v46  ;;  %v222_v48 = vsel %vm207_vm0, %v1391_v46, 0.0  ;;  %v208_v49 = vsel %vm207_vm0, %v1391_v46, -inf  ;;  %v1047_v54 = vld [vmem:[#allocation3 + $0x1c4] ss:$8 sps:$4 sm:$0xff]   ;;  %v1051_v62 = vld [vmem:[#allocation3 + $0x1c0] ss:$8 sps:$4 sm:$0xff]  }
  0x6a   : > { %476 = vmatpush1.bf16.msra.mxu0 %v1003_v18  ;;  %v223_v52 = vrot.slane %v222_v48, 4  ;;  %v209_v53 = vrot.slane %v208_v49, 4  ;;  %v1049_v55 = vld [vmem:[#allocation3 + $0xc4] ss:$8 sps:$4 sm:$0xff]   ;;  %v1052_v63 = vld [vmem:[#allocation3 + $0xc0] ss:$8 sps:$4 sm:$0xff]  }
  0x6b   : > { %677 = vmatpush1.bf16.msra.mxu1 %v1004_v19  ;;  %477 = vmatprep.subr.bf16.mxu0 %v1005_v20  ;;  %v229_v56 = vsel %vm207_vm0, %v205_v47, 0.0  ;;  %v215_v57 = vsel %vm207_vm0, %v205_v47, -inf  ;;  %v1055_v5 = vld [vmem:[#allocation3 + $0xd4] ss:$8 sps:$4 sm:$0xff]   ;;  %v1057_v10 = vld [vmem:[#allocation3 + $0x1d0] ss:$8 sps:$4 sm:$0xff]  }
  0x6c   : > { %678 = vmatprep.subr.bf16.mxu1 %v1007_v21  ;;  %v230_v58 = vrot.slane %v229_v56, 4  ;;  %v216_v59 = vrot.slane %v215_v57, 4  ;;  %v224_v60 = vadd.f32 %v223_v52, %v222_v48  ;;  %v210_v61 = vmax.f32 %v208_v49, %v209_v53  ;;  %v1058_v11 = vld [vmem:[#allocation3 + $0xd0] ss:$8 sps:$4 sm:$0xff]   ;;  %v1059_v15 = vld [vmem:[#allocation3 + $0x1e4] ss:$8 sps:$4 sm:$0xff]  }
  0x6d   : > { %v1061_v16 = vld [vmem:[#allocation3 + $0xe4] ss:$8 sps:$4 sm:$0xff]   ;;  %v1063_v21 = vld [vmem:[#allocation3 + $0x1e0] ss:$8 sps:$4 sm:$0xff]   ;;  %s915_s21 = sshll.u32 %s1259_s0, 7  ;;  %s202_s26 = scalar_lea.vmem [#allocation8], %s843_s30 }
  0x6e   : > { %478 = vmatpush1.bf16.msra.mxu0 %v1009_v22  ;;  %v231_v0 = vadd.f32 %v230_v58, %v229_v56  ;;  %v217_v1 = vmax.f32 %v215_v57, %v216_v59  ;;  %v225_v2 = vrot.slane %v224_v60, 2  ;;  %v211_v3 = vrot.slane %v210_v61, 2  ;;  %v1064_v22 = vld [vmem:[#allocation3 + $0xe0] ss:$8 sps:$4 sm:$0xff]   ;;  %s752_s27 = sshll.u32 %s202_s26, 4  ;;  %s1408_s7 = scalar_lea.hbm %s1455_s3, %s915_s21  ;;  %s1410_s27 = int_to_ptr.vmem [resolvable:$true] %s752_s27 }
  0x6f   : > { %679 = vmatpush1.bf16.msra.mxu1 %v1010_v23  ;;  %479 = vmatprep.subr.bf16.mxu0 %v1011_v24  ;;  %v723_v58 = vlaneseq  ;;  %s738_s8 = scalar_lea.sflag [#allocation5], %s1378_s24  ;;  %s1138_s9 = scalar_lea.vmem %s1410_s27, 128 }
  0x70   : > { %680 = vmatprep.subr.bf16.mxu1 %v1013_v25  ;;  %v232_v6 = vrot.slane %v231_v0, 2  ;;  %v218_v7 = vrot.slane %v217_v1, 2  ;;  %v226_v8 = vadd.f32 %v225_v2, %v224_v60  ;;  %v212_v9 = vmax.f32 %v210_v61, %v211_v3  ;;  %v1065_v25 = vld [vmem:[#allocation3 + $0x1f4] ss:$8 sps:$4 sm:$0xff]   ;;  %p1139_p4 = scmp.ne.s32.totalorder %s1410_s27, %s1138_s9  ;;  %s1214_s0 = smov [#allocation8]  }
  0x71   : > { %v724_v59 = vshrl.u32 %v723_v58, 7  ;;  %s1142_s10 = sshll.u32 %s1214_s0, 4  ;;  %s1143_s10 = int_to_ptr.vmem [resolvable:$false] %s1142_s10 }
  0x72   : > { %480 = vmatpush1.bf16.msra.mxu0 %v1015_v26  ;;  %v233_v12 = vadd.f32 %v232_v6, %v231_v0  ;;  %v219_v13 = vmax.f32 %v217_v1, %v218_v7  ;;  %v227_v14 = vrot.slane %v226_v8, 1  ;;  %v213_v20 = vrot.slane %v212_v9, 1  ;;  %v1067_v26 = vld [vmem:[#allocation3 + $0xf4] ss:$8 sps:$4 sm:$0xff]   ;;  %p1140_p6 = pnand %p1139_p4, %p1329_p12  ;;  %s1144_s11 = scalar_lea.vmem %s1143_s10, 256 }
  0x73   : > { %681 = vmatpush1.bf16.msra.mxu1 %v1016_v27  ;;  %481 = vmatprep.subr.bf16.mxu0 %v1017_v28  ;;  %v725_v60 = vsub.s32 0, %v724_v59  ;;  %p1145_p10 = scmp.lt.s32.totalorder %s1410_s27, %s1143_s10  ;;  %p1146_p13 = scmp.lt.s32.totalorder %s1144_s11, %s1138_s9 }
  0x74   : > { %682 = vmatprep.subr.bf16.mxu1 %v1019_v29  ;;  %v234_v17 = vrot.slane %v233_v12, 1  ;;  %v220_v18 = vrot.slane %v219_v13, 1  ;;  %v228_v19 = vadd.f32 %v227_v14, %v226_v8  ;;  %p1141_p8 = pneg %p1140_p6 }
  0x75   : > { %p1147_p3 = por %p1146_p13, %p1145_p10 }
  0x76   : > { %482 = vmatpush1.bf16.msra.mxu0 %v1021_v30  ;;  %v235_v23 = vadd.f32 %v234_v17, %v233_v12  ;;  %v221_v24 = vmax.f32 %v219_v13, %v220_v18  ;;  %v236_v29 = vmul.f32 0.25, %v228_v19  ;;  %v214_v30 = vmax.f32 %v212_v9, %v213_v20 }
  0x77   : > { %683 = vmatpush1.bf16.msra.mxu1 %v1022_v31  ;;  %483 = vmatprep.subr.bf16.mxu0 %v1023_v32  ;;  %v1069_v31 = vld [vmem:[#allocation3 + $0x1f0] ss:$8 sps:$4 sm:$0xff]   ;;  %p1148_p7 = pnand %p1147_p3, %p1141_p8 }
  0x78   : > { %684 = vmatprep.subr.bf16.mxu1 %v1025_v33  ;;  %v237_v27 = vmul.f32 0.25, %v235_v23  ;;  %v239_v28 = vpack.c.bf16 %v221_v24, %v221_v24  ;;  %v1070_v32 = vld [vmem:[#allocation3 + $0xf0] ss:$8 sps:$4 sm:$0xff]  }
  0x7a   : > { %484 = vmatpush1.bf16.msra.mxu0 %v1027_v34  ;;  %v273_v33 = vpack.c.bf16 %v237_v27, %v237_v27  ;;  %700 = vmatprep.mubr.bf16.mxu1 %v239_v28  ;;  %v272_v34 = vpack.c.bf16 %v236_v29, %v236_v29 }
  0x7b   : > { %685 = vmatpush1.bf16.msra.mxu1 %v1028_v35  ;;  %485 = vmatprep.subr.bf16.mxu0 %v1029_v36  ;;  %v238_v35 = vpack.c.bf16 %v214_v30, %v214_v30 }
  0x7c   : > { %686 = vmatprep.subr.bf16.mxu1 %v1031_v37  ;;  %499 = vmatprep.mubr.bf16.mxu0 %v273_v33 }
  0x7e   : > { %486 = vmatpush1.bf16.msra.mxu0 %v1033_v38  ;;  %v710_v38 = vstv %s709_s19 }
  0x7f   : > { %687 = vmatpush1.bf16.msra.mxu1 %v1034_v39  ;;  %487 = vmatprep.subr.bf16.mxu0 %v1035_v40 }
  0x80   : > { %688 = vmatprep.subr.bf16.mxu1 %v1037_v41 }
  0x82   : > { %488 = vmatpush1.bf16.msra.mxu0 %v1039_v42 }
  0x83   : > { %689 = vmatpush1.bf16.msra.mxu1 %v1040_v43  ;;  %489 = vmatprep.subr.bf16.mxu0 %v1041_v44 }
  0x84   : > { %690 = vmatprep.subr.bf16.mxu1 %v1043_v45 }
  0x86   : > { %490 = vmatpush1.bf16.msra.mxu0 %v1045_v50 }
  0x87   : > { %691 = vmatpush1.bf16.msra.mxu1 %v1046_v51  ;;  %491 = vmatprep.subr.bf16.mxu0 %v1047_v54 }
  0x88   : > { %692 = vmatprep.subr.bf16.mxu1 %v1049_v55 }
  0x8a   : > { %492 = vmatpush1.bf16.msra.mxu0 %v1051_v62 }
  0x8b   : > { %693 = vmatpush1.bf16.msra.mxu1 %v1052_v63  ;;  %493 = vmatprep.subr.bf16.mxu0 %v1053_v4 }
  0x8c   : > { %694 = vmatprep.subr.bf16.mxu1 %v1055_v5 }
  0x8e   : > { %494 = vmatpush1.bf16.msra.mxu0 %v1057_v10 }
  0x8f   : > { %695 = vmatpush1.bf16.msra.mxu1 %v1058_v11  ;;  %495 = vmatprep.subr.bf16.mxu0 %v1059_v15 }
  0x90   : > { %696 = vmatprep.subr.bf16.mxu1 %v1061_v16 }
  0x92   : > { %496 = vmatpush1.bf16.msra.mxu0 %v1063_v21 }
  0x93   : > { %697 = vmatpush1.bf16.msra.mxu1 %v1064_v22  ;;  %497 = vmatprep.subr.bf16.mxu0 %v1065_v25 }
  0x94   : > { %698 = vmatprep.subr.bf16.mxu1 %v1067_v26 }
  0x96   : > { %498 = vmatpush1.bf16.msra.mxu0 %v1069_v31 }
  0x97   : > { %699 = vmatpush1.bf16.msra.mxu1 %v1070_v32 }
  0x99   : > { %500 = vmatmul.mubr.bf16.vlgmr.msra.gmra.mrb[0].mxu0 %v272_v34 }
  0x9a   : > { %701 = vmatmul.mubr.bf16.vlgmr.msra.gmra.mrb[0].mxu1 %v238_v35 }
 0x16c   : > { %v501_v36 = vpop.f32.mrb[0].mxu0 }
 0x16d   : > { %v702_v37 = vpop.f32.mrb[0].mxu1  ;;  %v503_v40 = vpop.f32.mrb[1].mxu0 }
 0x16e   : > { %v703_v39 = vadd.f32 %v702_v37, %v501_v36  ;;  %v704_v41 = vpop.f32.mrb[1].mxu1  ;;  %v505_v43 = vpop.f32.mrb[2].mxu0 }
 0x16f   : > { %v705_v42 = vadd.f32 %v704_v41, %v503_v40  ;;  %v706_v44 = vpop.f32.mrb[2].mxu1  ;;  %v506_v47 = vpop.f32.mrb[3].mxu0 }
 0x170   : > { %v711_v45 = vadd.f32 %v710_v38, %v703_v39  ;;  %v707_v48 = vpop.f32.mrb[3].mxu1 }
 0x171   : > { %v712_v49 = vadd.f32 %v710_v38, %v705_v42 }
 0x172   : > { %v713_v50 = vsub.f32 0.0, %v711_v45 }
 0x173   : > { %v714_v51 = vsub.f32 0.0, %v712_v49 }
 0x174   : > { %v715_v52 = vmul.f32 1.442695, %v713_v50 }
 0x175   : > { %v717_v53 = vmul.f32 1.442695, %v714_v51 }
 0x176   : > { %1072 = vpow2.f32 %v715_v52 }
 0x177   : > { %1074 = vpow2.f32 %v717_v53 }
 0x180   : > { %v1073_v54 = vpop.eup %1072 }
 0x181   : > { %v1075_v55 = vpop.eup %1074  ;;  %v719_v56 = vadd.f32 1.0, %v1073_v54 }
 0x182   : > { %v720_v57 = vadd.f32 1.0, %v1075_v55 }
 0x183   : > { %1076 = vrcp.f32 %v719_v56 }
 0x184   : > { %1078 = vrcp.f32 %v720_v57 }
 0x18d   : > { %v1077_v61 = vpop.eup %1076 }
 0x18e   : > { %v1079_v62 = vpop.eup %1078  ;;  %v726_v63 = vrot.slane %v1077_v61, %v725_v60 }
 0x18f   : > { %v730_v0 = vrot.slane %v1079_v62, %v725_v60 }
 0x191   : > { %v733_v1 = vcombine.low %v726_v63, %v730_v0 }
 0x193   : > { %v735_v2 = vmul.f32 %v733_v1, %v1391_v46 }
 0x195   : > { %736 = vst [vmem:[%s202_s26] sm:$0xff] %v735_v2 }
 0x196   : > { %1151 = shalt.err (!%p1148_p7)
}
 0x197   : > { %s1152_s12 = scalar_lea.hbm %s1408_s7, 128  ;;  %s1156_s29 = scalar_lea.hbm %s1455_s3, 256 }
 0x198   : > { %p1153_p9 = scmp.ne.s32.totalorder %s1408_s7, %s1152_s12  ;;  %p1157_p0 = scmp.lt.u32.totalorder %s1408_s7, %s1455_s3 }
 0x199   : > { %p1158_p1 = scmp.lt.u32.totalorder %s1156_s29, %s1152_s12  ;;  %p1160_p4 = scmp.lt.u32.totalorder %s1152_s12, %s1408_s7 }
 0x19a   : > { %p1154_p2 = pnand %p1153_p9, %p1329_p12 }
 0x19b   : > { %p1159_p11 = por %p1158_p1, %p1157_p0 }
 0x19c   : > { %p1155_p5 = pneg %p1154_p2 }
 0x19d   : > { %p1161_p6 = por %p1160_p4, %p1159_p11 }
 0x19f   : > { %p1162_p8 = pnand %p1161_p6, %p1155_p5 }
 0x1a1   : > { %1165 = shalt.err (!%p1162_p8)
}
 0x1a2   : > { %922 = dma.vmem_to_hbm [thread:$0]  (%p1329_p12), %s1410_s27, 128, %s1408_s7, %s738_s8  }
 0x1a3 PF: > { %s764_s23 = sand.u32 1, %s1196_s14   ;;  %p1470_p10 = scmp.ne.s32.totalorder %s1460_s20, 0 }
 0x1a4   : > { %p1471_p13 = scmp.ge.s32.totalorder %s1208_s17, 2  ;;  %s765_s4 = scalar_lea.sflag [#allocation5], %s764_s23 }
 0x1a6   : > { %p933_p3 = pnand %p1471_p13, %p1470_p10 }
 0x1a8   : > { %1191 = dma.done.wait (!%p933_p3), %s765_s4, 128  }
 0x1a9   : > { %1193 = vsyncadd (!%p933_p3), %s765_s4, 4294967168  ;;  %p18_p7 = scmp.ge.s32.totalorder %s1294_s25, 4   ;;  %s1472_s14 = smov %s1200_s15 }
 0x1aa   : > { %s1473_s15 = smov %s1204_s16  ;;  %s1474_s16 = smov %s1325_s13 }
 0x1ab   : > { %s1475_s17 = smov %s1294_s25  ;;  %20 = sbr.rel (!%p18_p7) target bundleno = 8 (0x8), region = 83 }
 0x1b2   :  { %770 = vsyncpa [#allocation4], 1 }
 0x1b3   :  { %772 = vsyncpa [#allocation4 + $0x1], 1 }
 0x1b4   :  { %773 = vsyncpa [#allocation7], 1 }
 0x1b5   :  { %775 = vsyncpa [#allocation7 + $0x1], 1 }
 0x1b6   :  { %776 = vsyncpa [#allocation5], 1 }
 0x1b7   :  { %778 = vsyncpa [#allocation5 + $0x1], 1 }

</bundles_post_ra>
